<compile_context>
chip_gen: v5e
topology: v5e:2x2
jax: 0.10.0
libtpu: 0.0.40
codegen_flags: <defaults>
</compile_context>

<pallas_src>
import functools

import jax
import jax.numpy as jnp
from jax.experimental import pallas as pl
from jax.experimental.pallas import tpu as pltpu

_LANES = 128


def _label_count_kernel(t_ref, out_ref, *, labels, hw, needs_mask):
    """Accumulate per-label pixel counts over one (r_blk, 128) target tile.

    out_ref : (n_labels, fold_rows, 128) f32 lane-parallel partial counts for the
              current batch element; resident across the chunk grid axis.
    """
    c = pl.program_id(1)

    @pl.when(c == 0)
    def _():
        out_ref[...] = jnp.zeros_like(out_ref)

    t = t_ref[...]                          # (r_blk, 128) integer label map
    r_blk = t.shape[0]

    def fold(v):                            # (r_blk,128) -> (fold_rows,128); vreg adds only
        if r_blk % 8 == 0:
            return jnp.sum(v.reshape(-1, 8, _LANES), axis=0)
        return v

    def accumulate(valid):
        for k, lab in enumerate(labels):
            mk = t == lab
            if valid is not None:
                mk = jnp.logical_and(mk, valid)
            # select-by-mask (never exp/divide on raw data), so OOB garbage in the
            # tail block cannot leak NaN/Inf into the accumulators.
            out_ref[k] += fold(jnp.where(mk, 1.0, 0.0).astype(jnp.float32))

    if needs_mask:
        # Only the last pixel chunk contains padded / out-of-bounds lanes, so the
        # iota + compare mask work is hoisted off the steady-state path.
        is_tail = c == pl.num_programs(1) - 1

        @pl.when(is_tail)
        def _():
            row = jax.lax.broadcasted_iota(jnp.int32, t.shape, 0)
            lane = jax.lax.broadcasted_iota(jnp.int32, t.shape, 1)
            gpix = (c * r_blk + row) * _LANES + lane
            accumulate(gpix < hw)

        @pl.when(jnp.logical_not(is_tail))
        def _():
            accumulate(None)
    else:
        accumulate(None)


def shit_dice_loss(inputs, targets, labels, epsilon=1e-3, target_block_bytes=2 << 20):
    """Pallas TPU implementation of ShitDiceLoss.forward (returns scalar f32).

    inputs : (N, K, H, W) logits.  Only their shape matters: the channel softmax
             sums to 1, so the loss value is independent of the logits (matches
             the PyTorch reference up to a few ulps).
    targets: (N, 1, H, W) or (N, H, W) integer label map.
    labels : static sequence of label values.
    """
    x = jnp.asarray(inputs)
    t = jnp.asarray(targets)
    n, k_chan, h, w = x.shape
    hw = h * w
    labels = tuple(int(l) for l in labels)
    n_lab = len(labels)

    if t.dtype.itemsize != 4:
        t = t.astype(jnp.int32)             # keep 32-bit lane tiling for the streamed map
    t2 = t.reshape(n, hw)

    rows = pl.cdiv(hw, _LANES)
    if rows * _LANES != hw:
        # Lane-pad only the (small) label map; the padded tail is masked in-kernel.
        t2 = jnp.pad(t2, ((0, 0), (0, rows * _LANES - hw)))
    t3 = t2.reshape(n, rows, _LANES)

    bytes_per_row = _LANES * t3.dtype.itemsize
    r_cap = max(8, (target_block_bytes // bytes_per_row) // 8 * 8)
    r_blk = rows if rows <= r_cap else r_cap
    n_chunks = pl.cdiv(rows, r_blk)
    needs_mask = (n_chunks * r_blk * _LANES) != hw
    fold_rows = 8 if r_blk % 8 == 0 else r_blk

    kernel = functools.partial(
        _label_count_kernel, labels=labels, hw=hw, needs_mask=needs_mask
    )

    # Per-batch lane-parallel partial counts; batch axis is "parallel" so on v7x
    # the two TensorCores each stream their own batch shard (no shared scratch).
    partials = pl.pallas_call(
        kernel,
        out_shape=jax.ShapeDtypeStruct((n, n_lab, fold_rows, _LANES), jnp.float32),
        grid_spec=pltpu.PrefetchScalarGridSpec(
            num_scalar_prefetch=0,
            grid=(n, n_chunks),
            in_specs=[pl.BlockSpec((None, r_blk, _LANES), lambda b, c: (b, c, 0))],
            out_specs=pl.BlockSpec(
                (None, n_lab, fold_rows, _LANES), lambda b, c: (b, 0, 0, 0)
            ),
        ),
        compiler_params=pltpu.CompilerParams(
            dimension_semantics=("parallel", "arbitrary")
        ),
    )(t3)

    # Tiny scalar epilogue in plain JAX.  f32 lane buckets are exact up to 2^24
    # pixels per bucket, far beyond realistic image sizes.
    counts = jnp.sum(partials, axis=(0, 2, 3))                    # (n_lab,) pixel counts
    total_pred = jnp.float32(n * hw)                              # sum(softmax) == #pixels
    w_lab = 1.0 / (counts * counts + jnp.float32(epsilon))
    num = jnp.sum(w_lab * counts)                                 # w * sum(pred * y_true)
    den = jnp.sum(w_lab * (total_pred + jnp.float32(k_chan) * counts))  # w * sum(pred + y_true)
    # TODO(synk): if the intended semantics were per-class channels
    # (pred[:, k] * y_true), the logits would need to be streamed again and the
    # kernel restructured around a per-label channel gather.
    return 1.0 - 2.0 * num / den


def _shit_dice_loss_ref(inputs, targets, labels, epsilon=1e-3):
    pred = jax.nn.softmax(jnp.asarray(inputs, jnp.float32), axis=1)  # F.softmax dim=1 for 4-D
    t = jnp.asarray(targets).reshape(pred.shape[0], 1, *pred.shape[2:])
    num = jnp.float32(0.0)
    den = jnp.float32(0.0)
    for lab in labels:
        y = (t == lab).astype(jnp.float32)
        wgt = 1.0 / (jnp.sum(y) ** 2 + epsilon)
        num = num + wgt * jnp.sum(pred * y)
        den = den + wgt * jnp.sum(pred + y)
    return 1.0 - 2.0 * num / den


if __name__ == "__main__":
    key = jax.random.PRNGKey(0)
    k1, k2 = jax.random.split(key)
    labels = (0, 1, 2, 3)
    # NCHW logits and an integer label map, small shapes.
    x = jax.random.normal(k1, (2, 4, 16, 16), dtype=jnp.float32)
    tgt = jax.random.randint(k2, (2, 1, 16, 16), 0, 4, dtype=jnp.int32)

    loss = jax.block_until_ready(shit_dice_loss(x, tgt, labels, epsilon=1e-3))
    ref = _shit_dice_loss_ref(x, tgt, labels, epsilon=1e-3)
    assert jnp.allclose(loss, ref, atol=1e-4, rtol=1e-4), (loss, ref)
    print("KERNEL_OK")
</pallas_src>

<mosaic_0001>
module attributes {stable_mosaic.version = 11 : i64} {
  func.func @_label_count_kernel(%arg0: i32, %arg1: i32, %arg2: memref<1x2x128xi32, #tpu.memory_space<vmem>>, %arg3: memref<1x4x2x128xf32, #tpu.memory_space<vmem>>) attributes {dimension_semantics = [#tpu.dimension_semantics<parallel>, #tpu.dimension_semantics<arbitrary>], iteration_bounds = array<i64: 2, 1>, scalar_prefetch = 0 : i64, scratch_operands = 0 : i64, tpu.core_type = #tpu.core_type<tc>, window_params = [{transform_indices = @transform_0, window_bounds = array<i64: 1, 2, 128>}, {transform_indices = @transform_1, window_bounds = array<i64: 1, 4, 2, 128>}]} {
    %c0_i32 = arith.constant 0 : i32
    %0 = arith.cmpi eq, %arg1, %c0_i32 : i32
    %1 = arith.extui %0 : i1 to i32
    %c0_i32_0 = arith.constant 0 : i32
    %2 = arith.cmpi ne, %1, %c0_i32_0 : i32
    scf.if %2 {
      %cst_40 = arith.constant 0.000000e+00 : f32
      %49 = vector.broadcast %cst_40 : f32 to vector<4x2x128xf32>
      %c0_41 = arith.constant 0 : index
      %c0_42 = arith.constant 0 : index
      %c0_43 = arith.constant 0 : index
      %c0_44 = arith.constant 0 : index
      %50 = vector.load %arg3[%c0_41, %c0_42, %c0_43, %c0_44] : memref<1x4x2x128xf32, #tpu.memory_space<vmem>>, vector<1x4x2x128xf32>
      %51 = vector.shape_cast %50 : vector<1x4x2x128xf32> to vector<4x2x128xf32>
      %52 = vector.shape_cast %49 : vector<4x2x128xf32> to vector<1x4x2x128xf32>
      tpu.vector_store %arg3[%c0_41, %c0_42, %c0_43, %c0_44], %52 {strides = array<i32>} : memref<1x4x2x128xf32, #tpu.memory_space<vmem>>, vector<1x4x2x128xf32>,
    } else {
    }
    %c0 = arith.constant 0 : index
    %c0_1 = arith.constant 0 : index
    %c0_2 = arith.constant 0 : index
    %3 = vector.load %arg2[%c0, %c0_1, %c0_2] : memref<1x2x128xi32, #tpu.memory_space<vmem>>, vector<1x2x128xi32>
    %4 = vector.shape_cast %3 : vector<1x2x128xi32> to vector<2x128xi32>
    %c0_i32_3 = arith.constant 0 : i32
    %5 = vector.broadcast %c0_i32_3 : i32 to vector<2x128xi32>
    %6 = arith.cmpi eq, %4, %5 : vector<2x128xi32>
    %c0_4 = arith.constant 0 : index
    %c0_5 = arith.constant 0 : index
    %c0_6 = arith.constant 0 : index
    %c0_7 = arith.constant 0 : index
    %7 = vector.load %arg3[%c0_4, %c0_5, %c0_6, %c0_7] : memref<1x4x2x128xf32, #tpu.memory_space<vmem>>, vector<1x1x2x128xf32>
    %8 = vector.shape_cast %7 : vector<1x1x2x128xf32> to vector<2x128xf32>
    %cst = arith.constant 1.000000e+00 : f32
    %cst_8 = arith.constant 0.000000e+00 : f32
    %9 = vector.broadcast %cst : f32 to vector<2x128xf32>
    %10 = vector.broadcast %cst_8 : f32 to vector<2x128xf32>
    %11 = arith.select %6, %9, %10 : vector<2x128xi1>, vector<2x128xf32>
    %12 = arith.addf %8, %11 : vector<2x128xf32>
    %c0_9 = arith.constant 0 : index
    %c0_10 = arith.constant 0 : index
    %c0_11 = arith.constant 0 : index
    %c0_12 = arith.constant 0 : index
    %13 = vector.load %arg3[%c0_9, %c0_10, %c0_11, %c0_12] : memref<1x4x2x128xf32, #tpu.memory_space<vmem>>, vector<1x1x2x128xf32>
    %14 = vector.shape_cast %13 : vector<1x1x2x128xf32> to vector<2x128xf32>
    %15 = vector.shape_cast %12 : vector<2x128xf32> to vector<1x1x2x128xf32>
    tpu.vector_store %arg3[%c0_9, %c0_10, %c0_11, %c0_12], %15 {strides = array<i32>} : memref<1x4x2x128xf32, #tpu.memory_space<vmem>>, vector<1x1x2x128xf32>,
    %c1_i32 = arith.constant 1 : i32
    %16 = vector.broadcast %c1_i32 : i32 to vector<2x128xi32>
    %17 = arith.cmpi eq, %4, %16 : vector<2x128xi32>
    %c0_13 = arith.constant 0 : index
    %c1 = arith.constant 1 : index
    %c0_14 = arith.constant 0 : index
    %c0_15 = arith.constant 0 : index
    %18 = vector.load %arg3[%c0_13, %c1, %c0_14, %c0_15] : memref<1x4x2x128xf32, #tpu.memory_space<vmem>>, vector<1x1x2x128xf32>
    %19 = vector.shape_cast %18 : vector<1x1x2x128xf32> to vector<2x128xf32>
    %cst_16 = arith.constant 1.000000e+00 : f32
    %cst_17 = arith.constant 0.000000e+00 : f32
    %20 = vector.broadcast %cst_16 : f32 to vector<2x128xf32>
    %21 = vector.broadcast %cst_17 : f32 to vector<2x128xf32>
    %22 = arith.select %17, %20, %21 : vector<2x128xi1>, vector<2x128xf32>
    %23 = arith.addf %19, %22 : vector<2x128xf32>
    %c0_18 = arith.constant 0 : index
    %c1_19 = arith.constant 1 : index
    %c0_20 = arith.constant 0 : index
    %c0_21 = arith.constant 0 : index
    %24 = vector.load %arg3[%c0_18, %c1_19, %c0_20, %c0_21] : memref<1x4x2x128xf32, #tpu.memory_space<vmem>>, vector<1x1x2x128xf32>
    %25 = vector.shape_cast %24 : vector<1x1x2x128xf32> to vector<2x128xf32>
    %26 = vector.shape_cast %23 : vector<2x128xf32> to vector<1x1x2x128xf32>
    tpu.vector_store %arg3[%c0_18, %c1_19, %c0_20, %c0_21], %26 {strides = array<i32>} : memref<1x4x2x128xf32, #tpu.memory_space<vmem>>, vector<1x1x2x128xf32>,
    %c2_i32 = arith.constant 2 : i32
    %27 = vector.broadcast %c2_i32 : i32 to vector<2x128xi32>
    %28 = arith.cmpi eq, %4, %27 : vector<2x128xi32>
    %c0_22 = arith.constant 0 : index
    %c2 = arith.constant 2 : index
    %c0_23 = arith.constant 0 : index
    %c0_24 = arith.constant 0 : index
    %29 = vector.load %arg3[%c0_22, %c2, %c0_23, %c0_24] : memref<1x4x2x128xf32, #tpu.memory_space<vmem>>, vector<1x1x2x128xf32>
    %30 = vector.shape_cast %29 : vector<1x1x2x128xf32> to vector<2x128xf32>
    %cst_25 = arith.constant 1.000000e+00 : f32
    %cst_26 = arith.constant 0.000000e+00 : f32
    %31 = vector.broadcast %cst_25 : f32 to vector<2x128xf32>
    %32 = vector.broadcast %cst_26 : f32 to vector<2x128xf32>
    %33 = arith.select %28, %31, %32 : vector<2x128xi1>, vector<2x128xf32>
    %34 = arith.addf %30, %33 : vector<2x128xf32>
    %c0_27 = arith.constant 0 : index
    %c2_28 = arith.constant 2 : index
    %c0_29 = arith.constant 0 : index
    %c0_30 = arith.constant 0 : index
    %35 = vector.load %arg3[%c0_27, %c2_28, %c0_29, %c0_30] : memref<1x4x2x128xf32, #tpu.memory_space<vmem>>, vector<1x1x2x128xf32>
    %36 = vector.shape_cast %35 : vector<1x1x2x128xf32> to vector<2x128xf32>
    %37 = vector.shape_cast %34 : vector<2x128xf32> to vector<1x1x2x128xf32>
    tpu.vector_store %arg3[%c0_27, %c2_28, %c0_29, %c0_30], %37 {strides = array<i32>} : memref<1x4x2x128xf32, #tpu.memory_space<vmem>>, vector<1x1x2x128xf32>,
    %c3_i32 = arith.constant 3 : i32
    %38 = vector.broadcast %c3_i32 : i32 to vector<2x128xi32>
    %39 = arith.cmpi eq, %4, %38 : vector<2x128xi32>
    %c0_31 = arith.constant 0 : index
    %c3 = arith.constant 3 : index
    %c0_32 = arith.constant 0 : index
    %c0_33 = arith.constant 0 : index
    %40 = vector.load %arg3[%c0_31, %c3, %c0_32, %c0_33] : memref<1x4x2x128xf32, #tpu.memory_space<vmem>>, vector<1x1x2x128xf32>
    %41 = vector.shape_cast %40 : vector<1x1x2x128xf32> to vector<2x128xf32>
    %cst_34 = arith.constant 1.000000e+00 : f32
    %cst_35 = arith.constant 0.000000e+00 : f32
    %42 = vector.broadcast %cst_34 : f32 to vector<2x128xf32>
    %43 = vector.broadcast %cst_35 : f32 to vector<2x128xf32>
    %44 = arith.select %39, %42, %43 : vector<2x128xi1>, vector<2x128xf32>
    %45 = arith.addf %41, %44 : vector<2x128xf32>
    %c0_36 = arith.constant 0 : index
    %c3_37 = arith.constant 3 : index
    %c0_38 = arith.constant 0 : index
    %c0_39 = arith.constant 0 : index
    %46 = vector.load %arg3[%c0_36, %c3_37, %c0_38, %c0_39] : memref<1x4x2x128xf32, #tpu.memory_space<vmem>>, vector<1x1x2x128xf32>
    %47 = vector.shape_cast %46 : vector<1x1x2x128xf32> to vector<2x128xf32>
    %48 = vector.shape_cast %45 : vector<2x128xf32> to vector<1x1x2x128xf32>
    tpu.vector_store %arg3[%c0_36, %c3_37, %c0_38, %c0_39], %48 {strides = array<i32>} : memref<1x4x2x128xf32, #tpu.memory_space<vmem>>, vector<1x1x2x128xf32>,
    return
  }
  func.func @transform_0(%arg0: i32, %arg1: i32) -> (i32, i32, i32) {
    %c0_i32 = arith.constant 0 : i32
    %c0_i32_0 = arith.constant 0 : i32
    return %arg0, %arg1, %c0_i32 : i32, i32, i32
  }
  func.func @transform_1(%arg0: i32, %arg1: i32) -> (i32, i32, i32, i32) {
    %c0_i32 = arith.constant 0 : i32
    %c0_i32_0 = arith.constant 0 : i32
    %c0_i32_1 = arith.constant 0 : i32
    %c0_i32_2 = arith.constant 0 : i32
    return %arg0, %c0_i32, %c0_i32_0, %c0_i32_1 : i32, i32, i32, i32
  }
}

</mosaic_0001>

<bundles_post_ra>
// kernel: tpu_custom_call.1
= control target key start
LH: loop header
LB: loop body
LE: loop exit
PB: predicated region body
PF: predicated region fallthrough
CT: control target
= control target key end

     0   :  { %6 = vsyncpa [#allocation3], 0  ;;  %s628_s0 = inlined_call_operand.hbm [shape: s32[2,2,128], index: 0, kind: input, shape index: {}]   ;;  %s629_s1 = inlined_call_operand.hbm [shape: f32[2,4,2,128], index: 1, kind: output, shape index: {}]  }
   0x1   :  { %8 = vsyncpa [#allocation3 + $0x1], 0 }
   0x2   :  { %9 = vsyncpa [#allocation4], 0 }
   0x3   :  { %11 = vsyncpa [#allocation4 + $0x1], 0  ;;  %s492_s6 = smov 0   ;;  %s494_s7 = smov 0  }
   0x4   :  { %s496_s8 = smov 0   ;;  %s498_s9 = smov 0  }
   0x5   :  { %s500_s10 = smov 0   ;;  %s502_s11 = smov 0  }
   0x6 LB: > { %s279_s12 = sadd.s32 4294967295, %s477_s11   ;;  %s280_s13 = sadd.s32 4294967294, %s477_s11   ;;  %s477_s11 = sphi %s502_s11, %s17_s11   ;;  %s473_s10 = sphi %s500_s10, %s638_s10   ;;  %s469_s9 = sphi %s498_s9, %s637_s9   ;;  %s465_s8 = sphi %s496_s8, %s636_s8   ;;  %s461_s7 = sphi %s494_s7, %s635_s7   ;;  %s457_s6 = sphi %s492_s6, %s634_s6  }
   0x7   : > { %s29_s14 = sadd.s32 1, %s473_s10  ;;  %s38_s15 = sadd.s32 1, %s465_s8 }
   0x8   : > { %p31_p0 = scmp.ge.s32.totalorder %s29_s14, 2  ;;  %p45_p1 = scmp.ne.s32.totalorder %s465_s8, %s461_s7 }
   0x9   : > { %p46_p2 = scmp.eq.s32.totalorder %s477_s11, 0  ;;  %p51_p3 = scmp.ne.s32.totalorder %s461_s7, %s457_s6 }
   0xa   : > { %s640_s14 = smov (%p31_p0, %s29_s14), 0  ;;  %p52_p5 = scmp.eq.s32.totalorder %s279_s12, 0 }
   0xb   : > { %p533_p4 = por %p46_p2, %p45_p1  ;;  %s33_s17 = ssub.s32 %s473_s10, %s640_s14 }
   0xc   : > { %p75_p6 = scmp.eq.s32.totalorder %s279_s12, 1  ;;  %p36_p7 = scmp.eq.s32.totalorder %s33_s17, 0 }
   0xd   : > { %p539_p8 = por %p52_p5, %p51_p3  ;;  %p81_p10 = scmp.eq.s32.totalorder %s280_s13, 1 }
   0xe   : > { %p543_p9 = por %p75_p6, %p45_p1  ;;  %p282_p12 = scmp.ge.s32.totalorder %s477_s11, 2 }
   0xf   : > { %s548_s20 = scalar_select %p36_p7, %s465_s8, %s38_s15  }
  0x10   : > { %p550_p11 = por %p81_p10, %p51_p3  ;;  %p312_p13 = scmp.lt.s32.totalorder %s477_s11, 2 }
  0x11   : > { %s101_s22 = sand.u32 1, %s465_s8   ;;  %s284_s24 = sshll.u32 %s473_s10, 1 }
  0x12   : > { %s283_s23 = sshll.u32 %s101_s22, 1  ;;  %s110_s27 = scalar_lea.hbm %s628_s0, %s284_s24 }
  0x13   : > { %s105_s28 = scalar_lea.vmem [#allocation2], %s283_s23  ;;  %s112_s30 = sshll.u32 %s110_s27, 4  ;;  %s113_s30 = int_to_ptr.hbm [resolvable:$true] %s112_s30 }
  0x14   : > { %s114_s29 = sshll.u32 %s105_s28, 4  ;;  %p305_p0 = pnand %p312_p13, %p533_p4  ;;  %s115_s29 = int_to_ptr.vmem [resolvable:$true] %s114_s29 }
  0x15   : > { %p285_p1 = scmp.ge.s32.totalorder %s477_s11, 1  ;;  %p119_p2 = scmp.lt.s32.totalorder %s477_s11, 3 }
  0x16   : > { %s102_s2 = scalar_lea.sflag [#allocation3], %s101_s22 }
  0x17   : > { %307 = dma.hbm_to_vmem [thread:$0]  (!%p305_p0), %s113_s30, 32, %s115_s29, %s102_s2  }
  0x18   : > { %p120_p3 = pnand %p285_p1, %p119_p2 }
  0x19   : > { %s566_s3 = sand.u32 (!%p120_p3), 1, %s461_s7  }
  0x1a   : > { %123 = sbr.rel (%p120_p3) target bundleno = 51 (0x33), region = 24  ;;  %s286_s4 = sshll.u32 (!%p120_p3), %s566_s3, 1 }
  0x1b   : > { %s126_s5 = scalar_lea.sflag (!%p120_p3), [#allocation3], %s566_s3  ;;  %s129_s12 = scalar_lea.vmem (!%p120_p3), [#allocation2], %s286_s4 }
  0x1f   : > { %448 = dma.done.wait (%p539_p8), %s126_s5, 32  }
  0x20   : > { %450 = vsyncadd (%p539_p8), %s126_s5, 4294967264  ;;  %s287_s13 = sshll.u32 %s566_s3, 3  ;;  %v479_v0 = vmov 0.0   ;;  %s299_s16 = sshll.u32 %s469_s9, 3  ;;  %v157_v1 = vld [vmem:[%s129_s12] sm:$0x3] }
  0x21   : > { %s575_s15 = scalar_lea.vmem [#allocation5], %s287_s13  ;;  %s193_s22 = scalar_lea.hbm %s629_s1, %s299_s16  ;;  %vm158_vm0 = vcmp.eq.s32.totalorder %v157_v1, 0  ;;  %vm163_vm1 = vcmp.eq.s32.totalorder %v157_v1, 1  ;;  %vm169_vm2 = vcmp.eq.s32.totalorder %v157_v1, 2  ;;  %vm175_vm3 = vcmp.eq.s32.totalorder %v157_v1, 3 }
  0x22   : > { %153 = vst [vmem:[%s575_s15] sm:$0x3] %v479_v0  ;;  %s194_s23 = sshll.u32 %s575_s15, 4  ;;  %v160_v3 = vsel %vm158_vm0, 1.0, %v479_v0  ;;  %v166_v4 = vsel %vm163_vm1, 1.0, %v479_v0  ;;  %v172_v5 = vsel %vm169_vm2, 1.0, %v479_v0  ;;  %s196_s9 = sshll.u32 %s193_s22, 4  ;;  %s195_s23 = int_to_ptr.vmem [resolvable:$true] %s194_s23  ;;  %s197_s9 = int_to_ptr.hbm [resolvable:$true] %s196_s9 }
  0x23   : > { %154 = vst [vmem:[%s575_s15 + $0x2] sm:$0x3] %v479_v0  ;;  %v178_v8 = vsel %vm175_vm3, 1.0, %v479_v0  ;;  %s182_s24 = scalar_lea.sflag [#allocation4], %s566_s3  ;;  %s409_s25 = sshra.s32 %s197_s9, 4  ;;  %s410_s25 = int_to_ptr.hbm [resolvable:$true] %s409_s25 }
  0x24   : > { %155 = vst [vmem:[%s575_s15 + $0x4] sm:$0x3] %v479_v0  ;;  %s411_s26 = scalar_lea.hbm %s410_s25, 8  ;;  %s415_s29 = scalar_lea.hbm %s629_s1, 16 }
  0x25   : > { %156 = vst [vmem:[%s575_s15 + $0x6] sm:$0x3] %v479_v0  ;;  %p412_p4 = scmp.ne.s32.totalorder %s410_s25, %s411_s26  ;;  %p416_p7 = scmp.lt.s32.totalorder %s410_s25, %s629_s1 }
  0x26   : > { %p417_p8 = scmp.lt.s32.totalorder %s415_s29, %s411_s26 }
  0x27   : > { %p413_p5 = pnand %p412_p4, %p543_p9 }
  0x28   : > { %p418_p10 = por %p417_p8, %p416_p7 }
  0x29   : > { %v159_v2 = vld [vmem:[%s575_s15] sm:$0x3]  ;;  %p414_p6 = pneg %p413_p5 }
  0x2a   : > { %v161_v6 = vadd.f32 %v160_v3, %v159_v2  ;;  %v288_v7 = vld [vmem:[%s575_s15 + $0x2] sm:$0x3] }
  0x2b   : > { %v167_v9 = vadd.f32 %v288_v7, %v166_v4  ;;  %v290_v10 = vld [vmem:[%s575_s15 + $0x4] sm:$0x3]  ;;  %p419_p13 = pnand %p418_p10, %p414_p6 }
  0x2c   : > { %162 = vst [vmem:[%s575_s15] sm:$0x3] %v161_v6  ;;  %v173_v11 = vadd.f32 %v290_v10, %v172_v5  ;;  %v292_v12 = vld [vmem:[%s575_s15 + $0x6] sm:$0x3] }
  0x2d   : > { %289 = vst [vmem:[%s575_s15 + $0x2] sm:$0x3] %v167_v9  ;;  %v179_v13 = vadd.f32 %v292_v12, %v178_v8 }
  0x2e   : > { %291 = vst [vmem:[%s575_s15 + $0x4] sm:$0x3] %v173_v11 }
  0x2f   : > { %293 = vst [vmem:[%s575_s15 + $0x6] sm:$0x3] %v179_v13 }
  0x30   : > { %422 = shalt.err (!%p419_p13)
}
  0x31   : > { %s480_s3 = smov 32   ;;  %s481_s4 = smov 2  }
  0x32   : > { %302 = dma.vmem_to_hbm [thread:$0]  (%p543_p9), %s195_s23, 128, %s197_s9, %s182_s24, %s480_s3, %s480_s3, %s481_s4  }
  0x33 PF: > { %s211_s5 = sand.u32 1, %s457_s6   ;;  %p309_p0 = pnand %p282_p12, %p550_p11 }
  0x34   : > { %s212_s12 = scalar_lea.sflag [#allocation4], %s211_s5 }
  0x35   : > { %p310_p1 = pneg %p309_p0 }
  0x37   : > { %452 = dma.done.wait (%p310_p1), %s212_s12, 128  }
  0x38   : > { %454 = vsyncadd (%p310_p1), %s212_s12, 4294967168  ;;  %s17_s11 = sadd.s32 1, %s477_s11   ;;  %s634_s6 = smov %s461_s7 }
  0x39   : > { %p14_p2 = scmp.ge.s32.totalorder %s17_s11, 4   ;;  %s635_s7 = smov %s465_s8 }
  0x3a   : > { %s636_s8 = smov %s548_s20  ;;  %s637_s9 = smov %s473_s10 }
  0x3b   : > { %s638_s10 = smov %s640_s14  ;;  %16 = sbr.rel (!%p14_p2) target bundleno = 6 (0x6), region = 76 }
  0x40   :  { %218 = vsyncpa [#allocation3], 1 }
  0x41   :  { %220 = vsyncpa [#allocation3 + $0x1], 1 }
  0x42   :  { %221 = vsyncpa [#allocation4], 1 }
  0x43   :  { %223 = vsyncpa [#allocation4 + $0x1], 1 }

</bundles_post_ra>
